<compile_context>
chip_gen: v5e
topology: v5e:2x2
jax: 0.10.0
libtpu: 0.0.40
codegen_flags: <defaults>
</compile_context>

<pallas_src>
import functools

import jax
import jax.numpy as jnp
import numpy as np
from jax.experimental import pallas as pl
from jax.experimental.pallas import tpu as pltpu


def _round_up(x, m):
    return (x + m - 1) // m * m


def _pick_tn(o_pad, cap):
    """Largest multiple-of-128 divisor of o_pad that is <= cap.

    Prefers >= 2 N-tiles when o_pad >= 256 so v7x's two TensorCores both get
    work along the 'parallel' N axis.  o_pad must be a multiple of 128.
    """
    eff_cap = min(cap, o_pad // 2) if o_pad >= 256 else cap
    q = o_pad // 128
    best = 128
    for d in range(1, q + 1):
        if q % d == 0 and 128 * d <= eff_cap:
            best = 128 * d
    return best


def time_embed_kernel(x_ref, w_ref, b_ref, o_ref, *, matmul_dtype):
    # x_ref: (tm, T) f32, w_ref: (T, tn) matmul_dtype, b_ref: (1, tn) f32,
    # o_ref: (tm, tn).
    x = x_ref[...]
    # SiLU in f32 (v5e has no bf16 VPU/EUP); cast only right before the MXU.
    h = (x * jax.nn.sigmoid(x)).astype(matmul_dtype)
    y = jnp.dot(h, w_ref[...], preferred_element_type=jnp.float32)
    o_ref[...] = (y + b_ref[...]).astype(o_ref.dtype)


def time_embed(x, weight_t, bias, *, tm=None, tn=None,
               use_bf16_matmul=False, weight_buffers=2):
    """out = silu(x) @ weight_t + bias, reshaped to (B, O, 1, 1).

    x: (B, T) f32, weight_t: (T, O) (nn.Linear weight transposed),
    bias: (O,) f32.
    """
    B, T = x.shape
    T2, O = weight_t.shape
    assert T == T2, (T, T2)
    out_dtype = x.dtype
    matmul_dtype = jnp.bfloat16 if use_bf16_matmul else jnp.float32

    # Weight lives in HBM in the matmul dtype (bf16 halves the dominant
    # HBM stream; in a real deployment it would be stored this way).
    w_in = weight_t.astype(matmul_dtype)

    # ---- M tiling: batch is small for a time embedding; keep a single
    # M-tile whenever possible so x stays VMEM-resident for the whole kernel.
    if tm is None:
        tm = _round_up(B, 8) if B <= 256 else 256
    B_pad = _round_up(B, tm)

    # ---- N tiling: pad O only to a multiple of 128 (lane-dense stores),
    # then pick tn as a divisor of O_pad (no wasted weight DMA / MXU columns).
    if tn is None:
        O_pad = _round_up(O, 128)
        lane_cap = 2048 if use_bf16_matmul else 1024
        tn = _pick_tn(O_pad, lane_cap)
    else:
        O_pad = _round_up(O, tn)

    # Zero-pad in the wrapper (sliced away afterwards). Padded rows/cols are
    # zeros through silu/matmul (or bias-only columns) and get dropped.
    x_p = x if B_pad == B else jnp.pad(x, ((0, B_pad - B), (0, 0)))
    w_p = w_in if O_pad == O else jnp.pad(w_in, ((0, 0), (0, O_pad - O)))
    b_p = bias if O_pad == O else jnp.pad(bias, (0, O_pad - O))
    b2d = b_p.reshape(1, O_pad).astype(jnp.float32)

    num_n = O_pad // tn
    num_m = B_pad // tm
    grid = (num_n, num_m)  # N outer, M inner -> weight block invariant along
                           # the innermost axis => streamed from HBM once.

    # VMEM budget from the actual buffered footprint (<= 48 MiB: v7x-safe).
    w_itemsize = jnp.dtype(matmul_dtype).itemsize
    o_itemsize = jnp.dtype(out_dtype).itemsize
    buffered_bytes = (
        weight_buffers * T * tn * w_itemsize
        + 2 * (tm * T * 4 + tn * 4 + tm * tn * o_itemsize)
    )
    vmem_limit = int(min(max(buffered_bytes + (4 << 20), 32 << 20), 48 << 20))

    w_spec_kwargs = {}
    if weight_buffers != 2:
        # Deeper weight pipeline if DMA turnaround is exposed (v6e).
        w_spec_kwargs["pipeline_mode"] = pl.Buffered(weight_buffers)

    kernel = functools.partial(time_embed_kernel, matmul_dtype=matmul_dtype)

    out = pl.pallas_call(
        kernel,
        out_shape=jax.ShapeDtypeStruct((B_pad, O_pad), out_dtype),
        grid_spec=pltpu.PrefetchScalarGridSpec(
            num_scalar_prefetch=0,
            grid=grid,
            in_specs=[
                # x varies only with the inner M axis; with a single M-tile it
                # is resident across the entire weight stream.
                pl.BlockSpec((tm, T), lambda j, i: (i, 0)),
                # weight is invariant along the innermost axis -> one HBM pass.
                pl.BlockSpec((T, tn), lambda j, i: (0, j), **w_spec_kwargs),
                pl.BlockSpec((1, tn), lambda j, i: (0, j)),
            ],
            out_specs=pl.BlockSpec((tm, tn), lambda j, i: (i, j)),
        ),
        compiler_params=pltpu.CompilerParams(
            dimension_semantics=("parallel", "parallel"),
            vmem_limit_bytes=vmem_limit,
        ),
    )(x_p, w_p, b2d)

    # rearrange 'b c -> b c 1 1' (glue, not compute) after dropping padding.
    return out[:B, :O].reshape(B, O, 1, 1)


def reference(x, weight_t, bias):
    h = x * jax.nn.sigmoid(x)
    return (h @ weight_t + bias).reshape(x.shape[0], weight_t.shape[1], 1, 1)


def _make_params(key, time_dim, out_dim):
    kw, kb = jax.random.split(key)
    bound = 1.0 / np.sqrt(time_dim)
    # nn.Linear shapes: weight (out_dim, time_dim), bias (out_dim,).
    weight = jax.random.uniform(
        kw, (out_dim, time_dim), dtype=jnp.float32, minval=-bound, maxval=bound
    )
    bias = jax.random.uniform(
        kb, (out_dim,), dtype=jnp.float32, minval=-bound, maxval=bound
    )
    return weight.T, bias  # store weight transposed: (time_dim, out_dim)


if __name__ == "__main__":
    key = jax.random.PRNGKey(0)
    k1, k2, k3, k4, k5, k6 = jax.random.split(key, 6)

    # --- Small test matching the module's toy shapes (B=2, T=32, O=64). ---
    B, TIME_DIM, OUT_DIM = 2, 32, 64
    x = jax.random.normal(k1, (B, TIME_DIM), dtype=jnp.float32)
    weight_t, bias = _make_params(k2, TIME_DIM, OUT_DIM)

    out = jax.block_until_ready(time_embed(x, weight_t, bias))
    ref = reference(x, weight_t, bias)
    assert out.shape == (B, OUT_DIM, 1, 1), out.shape
    np.testing.assert_allclose(np.asarray(out), np.asarray(ref), rtol=1e-5, atol=1e-5)

    # --- Multi-N-tile path: single M-tile, weight streamed once (grid (5,1)). ---
    B2, T2, O2 = 256, 128, 640
    x2 = jax.random.normal(k3, (B2, T2), dtype=jnp.float32)
    weight_t2, bias2 = _make_params(k4, T2, O2)

    out2 = jax.block_until_ready(time_embed(x2, weight_t2, bias2))
    ref2 = reference(x2, weight_t2, bias2)
    assert out2.shape == (B2, O2, 1, 1), out2.shape
    np.testing.assert_allclose(np.asarray(out2), np.asarray(ref2), rtol=1e-5, atol=1e-5)

    # --- bf16 weight-in-HBM fast path (f32 accumulation), looser tolerance. ---
    B3, T3, O3 = 8, 64, 256
    x3 = jax.random.normal(k5, (B3, T3), dtype=jnp.float32)
    weight_t3, bias3 = _make_params(k6, T3, O3)

    out3 = jax.block_until_ready(
        time_embed(x3, weight_t3, bias3, use_bf16_matmul=True)
    )
    ref3 = reference(x3, weight_t3, bias3)
    assert out3.shape == (B3, O3, 1, 1), out3.shape
    np.testing.assert_allclose(np.asarray(out3), np.asarray(ref3), rtol=2e-2, atol=2e-2)

    print("KERNEL_OK")
</pallas_src>

<mosaic_0001>
module attributes {stable_mosaic.version = 11 : i64} {
  func.func @time_embed_kernel(%arg0: i32, %arg1: i32, %arg2: memref<8x32xf32, #tpu.memory_space<vmem>>, %arg3: memref<32x128xf32, #tpu.memory_space<vmem>>, %arg4: memref<1x128xf32, #tpu.memory_space<vmem>>, %arg5: memref<8x128xf32, #tpu.memory_space<vmem>>) attributes {dimension_semantics = [#tpu.dimension_semantics<parallel>, #tpu.dimension_semantics<parallel>], iteration_bounds = array<i64: 1, 1>, scalar_prefetch = 0 : i64, scratch_operands = 0 : i64, tpu.core_type = #tpu.core_type<tc>, window_params = [{transform_indices = @transform_0, window_bounds = array<i64: 8, 32>}, {transform_indices = @transform_1, window_bounds = array<i64: 32, 128>}, {transform_indices = @transform_2, window_bounds = array<i64: 1, 128>}, {transform_indices = @transform_3, window_bounds = array<i64: 8, 128>}]} {
    %c0 = arith.constant 0 : index
    %c0_0 = arith.constant 0 : index
    %0 = vector.load %arg2[%c0, %c0_0] : memref<8x32xf32, #tpu.memory_space<vmem>>, vector<8x32xf32>
    %1 = arith.negf %0 : vector<8x32xf32>
    %2 = math.exp %1 : vector<8x32xf32>
    %cst = arith.constant 1.000000e+00 : f32
    %3 = vector.broadcast %cst : f32 to vector<8x32xf32>
    %4 = arith.addf %3, %2 : vector<8x32xf32>
    %5 = arith.divf %3, %4 : vector<8x32xf32>
    %6 = arith.mulf %0, %5 : vector<8x32xf32>
    %c0_1 = arith.constant 0 : index
    %c0_2 = arith.constant 0 : index
    %7 = vector.load %arg3[%c0_1, %c0_2] : memref<32x128xf32, #tpu.memory_space<vmem>>, vector<32x128xf32>
    %cst_3 = arith.constant dense<0.000000e+00> : vector<8x128xf32>
    %8 = tpu.matmul %6, %7, %cst_3 {dimension_numbers = #tpu.dot_dimension_numbers<[1], [0], [0], [1], [0, 0, 1, 1], [], []>} : vector<8x32xf32>, vector<32x128xf32>, vector<8x128xf32> -> vector<8x128xf32>
    %c0_4 = arith.constant 0 : index
    %c0_5 = arith.constant 0 : index
    %9 = vector.load %arg4[%c0_4, %c0_5] : memref<1x128xf32, #tpu.memory_space<vmem>>, vector<1x128xf32>
    %10 = vector.broadcast %9 : vector<1x128xf32> to vector<8x128xf32>
    %11 = arith.addf %8, %10 : vector<8x128xf32>
    %c0_6 = arith.constant 0 : index
    %c0_7 = arith.constant 0 : index
    %12 = vector.load %arg5[%c0_6, %c0_7] : memref<8x128xf32, #tpu.memory_space<vmem>>, vector<8x128xf32>
    tpu.vector_store %arg5[%c0_6, %c0_7], %11 {strides = array<i32>} : memref<8x128xf32, #tpu.memory_space<vmem>>, vector<8x128xf32>,
    return
  }
  func.func @transform_0(%arg0: i32, %arg1: i32) -> (i32, i32) {
    %c0_i32 = arith.constant 0 : i32
    %c0_i32_0 = arith.constant 0 : i32
    return %arg1, %c0_i32 : i32, i32
  }
  func.func @transform_1(%arg0: i32, %arg1: i32) -> (i32, i32) {
    %c0_i32 = arith.constant 0 : i32
    %c0_i32_0 = arith.constant 0 : i32
    return %c0_i32, %arg0 : i32, i32
  }
  func.func @transform_2(%arg0: i32, %arg1: i32) -> (i32, i32) {
    %c0_i32 = arith.constant 0 : i32
    %c0_i32_0 = arith.constant 0 : i32
    return %c0_i32, %arg0 : i32, i32
  }
  func.func @transform_3(%arg0: i32, %arg1: i32) -> (i32, i32) {
    %c0_i32 = arith.constant 0 : i32
    return %arg1, %arg0 : i32, i32
  }
}

</mosaic_0001>

<bundles_post_ra>
// kernel: tpu_custom_call.1
= control target key start
LH: loop header
LB: loop body
LE: loop exit
PB: predicated region body
PF: predicated region fallthrough
CT: control target
= control target key end

     0   :  { %8 = vsyncpa [#allocation3], 0  ;;  %s244_s0 = inlined_call_operand.hbm [shape: f32[8,32], index: 0, kind: input, shape index: {}]   ;;  %s245_s1 = inlined_call_operand.hbm [shape: f32[32,128], index: 1, kind: input, shape index: {}]   ;;  %s246_s2 = inlined_call_operand.vmem [shape: f32[1,128], index: 2, kind: input, shape index: {}]   ;;  %s247_s3 = inlined_call_operand.hbm [shape: f32[8,128], index: 3, kind: output, shape index: {}]  }
   0x1   :  { %9 = vsyncpa [#allocation6], 0 }
   0x2   :  { %10 = vsyncpa [#allocation4], 0  ;;  %s16_s14 = sshll.u32 %s244_s0, 4  ;;  %s207_s15 = smov [#allocation2]   ;;  %s17_s14 = int_to_ptr.hbm [resolvable:$true] %s16_s14 }
   0x3   :  { %s18_s16 = sshll.u32 %s207_s15, 4  ;;  %s26_s19 = sshll.u32 %s245_s1, 4  ;;  %s19_s16 = int_to_ptr.vmem [resolvable:$true] %s18_s16  ;;  %s27_s19 = int_to_ptr.hbm [resolvable:$true] %s26_s19 }
   0x4   :  { %21 = dma.hbm_to_vmem [thread:$0]  %s17_s14, 128, %s19_s16, [#allocation3]  }
   0x5   :  { %s208_s20 = smov [#allocation5]   ;;  %s209_s22 = smov 128  }
   0x6   :  { %s28_s21 = sshll.u32 %s208_s20, 4  ;;  %s210_s23 = smov 8   ;;  %s29_s21 = int_to_ptr.vmem [resolvable:$true] %s28_s21 }
   0x7   :  { %34 = dma.hbm_to_vmem [thread:$0]  %s27_s19, 512, %s29_s21, [#allocation6], %s209_s22, %s209_s22, %s210_s23  }
   0x8   :  { %201 = dma.done.wait [#allocation3], 128  }
   0x9   :  { %202 = vsyncadd [#allocation3], 4294967168 }
   0xa   :  { %203 = dma.done.wait [#allocation6], 512  }
   0xb   :  { %204 = vsyncadd [#allocation6], 4294966784  ;;  %v69_v0 = vld [vmem:[#allocation5 + $0x18] sm:$0xff]  ;;  %v68_v1 = vld [vmem:[#allocation5 + $0x10] sm:$0xff]  ;;  %vm74_vm4 = vcmask 261120   ;;  %s211_s24 = smov [#allocation7]  }
   0xc   :  { %90 = vmatpush.msra.mxu0 %v69_v0  ;;  %v45_v2 = vld [vmem:[#allocation2] sm:$0xff]  ;;  %v67_v3 = vld [vmem:[#allocation5 + $0x8] sm:$0xff]  ;;  %v66_v5 = vld [vmem:[#allocation5] sm:$0xff]  ;;  %s104_s25 = sshll.u32 %s211_s24, 4  ;;  %s106_s28 = sshll.u32 %s247_s3, 4  ;;  %s105_s25 = int_to_ptr.vmem [resolvable:$true] %s104_s25  ;;  %s107_s28 = int_to_ptr.hbm [resolvable:$true] %s106_s28 }
   0xd   :  { %v117_v4 = vmul.f32 -1.442695, %v45_v2  ;;  %v124_v19 = vld [vmem:[%s246_s2] ss:$0 sm:$0xff] }
   0xe   :  { %91 = vmatpush.msra.mxu0 %v68_v1 }
   0xf   :  { %125 = vpow2.f32 %v117_v4 }
  0x10   :  { %92 = vmatpush.msra.mxu0 %v67_v3 }
  0x12   :  { %93 = vmatpush.msra.mxu0 %v66_v5 }
  0x15   :  { %v126_v6 = vpop.eup %125 }
  0x16   :  { %v49_v7 = vadd.f32 1.0, %v126_v6 }
  0x18   :  { %127 = vrcp.f32 %v49_v7  ;;  %v61_v10 = vand.u32 2147483648, %v49_v7  ;;  %vm55_vm0 = vweird.f32 %v49_v7  ;;  %v59_v12 = vand.u32 2147483647, %v49_v7 }
  0x1a   :  { %v62_v14 = vor.u32 1.1754944e-38, %v61_v10  ;;  %vm60_vm3 = vcmp.eq.f32.partialorder %v59_v12, 8.507059e+37 }
  0x1e   :  { %v128_v8 = vpop.eup %127 }
  0x1f   :  { %v51_v9 = vmul.f32 %v128_v8, %v49_v7  ;;  %vm56_vm1 = vweird.f32 %v128_v8 }
  0x20   :  { %vm57_vm2 = vmor %vm55_vm0, %vm56_vm1 }
  0x21   :  { %v52_v11 = vsub.f32 1.0, %v51_v9 }
  0x23   :  { %v53_v13 = vmul.f32 %v128_v8, %v52_v11 }
  0x25   :  { %v54_v15 = vadd.f32 %v128_v8, %v53_v13 }
  0x27   :  { %v58_v16 = vsel %vm57_vm2, %v128_v8, %v54_v15 }
  0x28   :  { %v63_v17 = vsel %vm60_vm3, %v62_v14, %v58_v16 }
  0x29   :  { %v65_v18 = vmul.f32 %v63_v17, %v45_v2 }
  0x2b   :  { %118 = vmatmul.msk.f32.vlgmr.msra.gmra.mxu0 %vm74_vm4, %v65_v18 }
  0xa8   :  { %v95_v20 = vpop.f32.mrf.mxu0 }
  0xa9   :  { %v96_v21 = vadd.f32 %v124_v19, %v95_v20 }
  0xab   :  { %98 = vst [vmem:[#allocation7] sm:$0xff] %v96_v21 }
  0xac   :  { %109 = dma.vmem_to_hbm [thread:$0]  %s105_s25, 128, %s107_s28, [#allocation4]  }
  0xad   :  { %205 = dma.done.wait [#allocation4], 128  }
  0xae   :  { %206 = vsyncadd [#allocation4], 4294967168 }
  0xaf   :  { %114 = vsyncpa [#allocation3], 1 }
  0xb0   :  { %115 = vsyncpa [#allocation6], 1 }
  0xb1   :  { %116 = vsyncpa [#allocation4], 1 }

</bundles_post_ra>
